<compile_context>
chip_gen: v5e
topology: v5e:2x2
jax: 0.10.0
libtpu: 0.0.40
codegen_flags: <defaults>
</compile_context>

<pallas_src>
import functools

import jax
import jax.numpy as jnp
from jax.experimental import pallas as pl
from jax.experimental.pallas import tpu as pltpu


# ---------------------------------------------------------------------------
# Kernel body
# ---------------------------------------------------------------------------
def _classifier_kernel(x_ref, w_ref, b_ref, o_ref, *, compute_dtype):
    # x_ref: (tm, K) activations (f32, cast on the fly — per-call data, casting
    #        it host-side would just add an extra HBM pass).
    # w_ref: (K, tn) pre-scaled, pre-cast weight tile (already compute_dtype).
    # b_ref: (1, tn) pre-scaled bias (f32).
    x = x_ref[...].astype(compute_dtype)
    acc = jnp.dot(x, w_ref[...], preferred_element_type=jnp.float32)
    # Fused epilogue: scales already folded into weight/bias -> just bias add.
    o_ref[...] = (acc + b_ref[...]).astype(o_ref.dtype)


# ---------------------------------------------------------------------------
# Tiling / VMEM heuristics
# ---------------------------------------------------------------------------
def _vmem_cap_bytes():
    """Generation-aware scoped-VMEM budget: physical VMEM minus ~16 MiB of
    headroom for Mosaic internal scratch, capped at 64 MiB.
    v5e/v6e (128 MiB physical) -> 64 MiB budget; v7x (64 MiB) -> 48 MiB."""
    try:
        physical = int(pltpu.get_tpu_info().vmem_capacity_bytes)
    except Exception:  # info unavailable at trace time -> conservative (v7x-sized)
        physical = 64 << 20
    return int(min(max(physical - (16 << 20), 16 << 20), 64 << 20))


def _round_down(v, m):
    return (v // m) * m


def _round_up(v, m):
    return -(-v // m) * m


def _estimate_vmem(tm, tn, K, x_itemsize, w_itemsize):
    # Double-buffered x, weight, bias inputs and f32 output.
    return 2 * (tm * K * x_itemsize + K * tn * w_itemsize + tm * tn * 4 + tn * 4)


def _pick_tiles(M, N, K, vmem_cap, x_itemsize, w_itemsize):
    x_budget = vmem_cap // 6          # one (tm, K) activation buffer
    w_budget = vmem_cap // 3          # one (K, tn) weight buffer
    tm_cap = max(8, min(512, _round_down(x_budget // (K * x_itemsize), 8)))
    tn_cap = max(128, min(2048, _round_down(w_budget // (K * w_itemsize), 128)))
    tm = M if M <= tm_cap else tm_cap
    tn = N if N <= tn_cap else tn_cap

    # Safety net for very large K: shrink until double-buffered tiles fit.
    while _estimate_vmem(tm, tn, K, x_itemsize, w_itemsize) > vmem_cap:
        if tn > 128:
            tn = max(128, _round_down(tn // 2, 128))
        elif tm > 8:
            tm = max(8, _round_down(tm // 2, 8))
        else:
            # TODO(synk): K-tiled accumulator variant for feat_dim so large that
            # even minimum (8, K)/(K, 128) tiles exceed the VMEM budget.
            break

    # Keep both TensorCores busy on multi-core chips (v7x): never emit a
    # single-program grid when the problem can be split (cheap on 1-TC chips).
    if pl.cdiv(M, tm) * pl.cdiv(N, tn) < 2:
        if N > 128:
            tn = min(tn, max(128, _round_up((N + 1) // 2, 128)))
        elif M > 8:
            tm = min(tm, max(8, _round_up((M + 1) // 2, 8)))
    return tm, tn


# ---------------------------------------------------------------------------
# Parameter preprocessing (done once, outside the kernel)
# ---------------------------------------------------------------------------
def prepare_classifier_params(weight, bias, scales, compute_dtype=jnp.bfloat16):
    """Fold the per-class scales into the frozen fc parameters, pre-transpose
    the weight to (K, N) and pre-cast it to the matmul compute dtype.
    y = (x @ W.T + b) * s  ==  x @ (W * s[:,None]).T + b * s."""
    w_scaled = weight.astype(jnp.float32) * scales.astype(jnp.float32)[:, None]
    w_kn = jnp.transpose(w_scaled).astype(compute_dtype)            # (K, N)
    b_scaled = (bias.astype(jnp.float32) * scales.astype(jnp.float32)).reshape(1, -1)
    return w_kn, b_scaled


# ---------------------------------------------------------------------------
# Pallas entry point
# ---------------------------------------------------------------------------
def classifier_matmul(x, w_kn, b_scaled, *, compute_dtype=None):
    """y = x @ w_kn + b_scaled  (tiled MXU matmul, fused bias epilogue)."""
    if compute_dtype is None:
        compute_dtype = w_kn.dtype
    orig_shape = x.shape
    K = orig_shape[-1]
    x2 = x.reshape(-1, K)
    M = x2.shape[0]
    Kw, N = w_kn.shape
    assert K == Kw, "feat_dim mismatch between x and weight"

    vmem_cap = _vmem_cap_bytes()
    x_item = x2.dtype.itemsize
    w_item = w_kn.dtype.itemsize
    tm, tn = _pick_tiles(M, N, K, vmem_cap, x_item, w_item)
    gm, gn = pl.cdiv(M, tm), pl.cdiv(N, tn)

    # Static grid-order choice: put the heavier operand on the OUTER axis so its
    # block index is constant across the inner loop and Pallas DMAs it only once.
    w_bytes = N * K * w_item
    x_bytes = M * K * x_item
    traffic_m_outer = gm * w_bytes + x_bytes   # weight re-streamed per M-tile
    traffic_n_outer = w_bytes + gn * x_bytes   # x re-streamed per N-tile

    kernel = functools.partial(_classifier_kernel, compute_dtype=compute_dtype)

    if traffic_m_outer <= traffic_n_outer:
        grid = (gm, gn)
        in_specs = [
            pl.BlockSpec((tm, K), lambda i, j: (i, 0)),   # x slab (full K)
            pl.BlockSpec((K, tn), lambda i, j: (0, j)),   # weight slab (K, tn)
            pl.BlockSpec((1, tn), lambda i, j: (0, j)),   # pre-scaled bias
        ]
        out_specs = pl.BlockSpec((tm, tn), lambda i, j: (i, j))
    else:
        grid = (gn, gm)                                    # weight on the outer axis
        in_specs = [
            pl.BlockSpec((tm, K), lambda j, i: (i, 0)),
            pl.BlockSpec((K, tn), lambda j, i: (0, j)),
            pl.BlockSpec((1, tn), lambda j, i: (0, j)),
        ]
        out_specs = pl.BlockSpec((tm, tn), lambda j, i: (i, j))

    # NOTE: if a profile ever shows exposed DMA on the dominant stream, bump its
    # BlockSpec to pipeline_mode=pl.Buffered(3) on v5e/v6e (not at max tiles on v7x).
    out = pl.pallas_call(
        kernel,
        out_shape=jax.ShapeDtypeStruct((M, N), x2.dtype),
        grid=grid,
        in_specs=in_specs,
        out_specs=out_specs,
        compiler_params=pltpu.CompilerParams(
            dimension_semantics=("parallel", "parallel"),
            vmem_limit_bytes=int(vmem_cap),
        ),
    )(x2, w_kn, b_scaled)
    return out.reshape(orig_shape[:-1] + (N,))


def dot_product_classifier(x, weight, bias, scales, *, compute_dtype=jnp.bfloat16):
    """Pallas TPU forward for DotProduct_Classifier: y = (x @ weight.T + bias) * scales.
    weight: (num_classes, feat_dim) native nn.Linear layout.
    Pass compute_dtype=jnp.float32 for full-precision parity with the PyTorch module."""
    w_kn, b_scaled = prepare_classifier_params(weight, bias, scales, compute_dtype)
    return classifier_matmul(x, w_kn, b_scaled, compute_dtype=compute_dtype)


# ---------------------------------------------------------------------------
# Self-test
# ---------------------------------------------------------------------------
if __name__ == "__main__":
    # Small shapes consistent with the module (feat_dim -> num_classes linear).
    batch, feat_dim, num_classes = 16, 512, 384

    key = jax.random.PRNGKey(0)
    kx, kw, kb = jax.random.split(key, 3)

    x = jax.random.normal(kx, (batch, feat_dim), dtype=jnp.float32)
    weight = jax.random.normal(kw, (num_classes, feat_dim), dtype=jnp.float32) * 0.02
    bias = jax.random.normal(kb, (num_classes,), dtype=jnp.float32) * 0.01
    scales = jnp.ones((num_classes,), dtype=jnp.float32)   # Parameter(torch.ones(num_classes))

    y = dot_product_classifier(x, weight, bias, scales)
    y = jax.block_until_ready(y)

    assert y.shape == (batch, num_classes)

    # Tight check vs a reference doing the same bf16-operand / f32-accum math.
    w_kn, b_scaled = prepare_classifier_params(weight, bias, scales)
    y_ref_bf16 = jnp.dot(x.astype(jnp.bfloat16), w_kn,
                         preferred_element_type=jnp.float32) + b_scaled
    assert jnp.allclose(y, y_ref_bf16, atol=1e-3, rtol=1e-3), "mismatch vs bf16 reference"

    # Loose sanity check vs the full-f32 module math (bf16 operand rounding).
    y_ref_f32 = (x @ weight.T + bias) * scales
    assert jnp.allclose(y, y_ref_f32, atol=5e-2), "mismatch vs f32 reference"

    print("KERNEL_OK")
</pallas_src>

<mosaic_0001>
module attributes {stable_mosaic.version = 11 : i64} {
  func.func @_classifier_kernel(%arg0: i32, %arg1: i32, %arg2: memref<16x512xf32, #tpu.memory_space<vmem>>, %arg3: memref<512x256xbf16, #tpu.memory_space<vmem>>, %arg4: memref<1x256xf32, #tpu.memory_space<vmem>>, %arg5: memref<16x256xf32, #tpu.memory_space<vmem>>) attributes {dimension_semantics = [#tpu.dimension_semantics<parallel>, #tpu.dimension_semantics<parallel>], iteration_bounds = array<i64: 1, 2>, scalar_prefetch = 0 : i64, scratch_operands = 0 : i64, tpu.core_type = #tpu.core_type<tc>, window_params = [{transform_indices = @transform_0, window_bounds = array<i64: 16, 512>}, {transform_indices = @transform_1, window_bounds = array<i64: 512, 256>}, {transform_indices = @transform_2, window_bounds = array<i64: 1, 256>}, {transform_indices = @transform_3, window_bounds = array<i64: 16, 256>}]} {
    %c0 = arith.constant 0 : index
    %c0_0 = arith.constant 0 : index
    %0 = vector.load %arg2[%c0, %c0_0] : memref<16x512xf32, #tpu.memory_space<vmem>>, vector<16x512xf32>
    %1 = arith.truncf %0 : vector<16x512xf32> to vector<16x512xbf16>
    %c0_1 = arith.constant 0 : index
    %c0_2 = arith.constant 0 : index
    %2 = vector.load %arg3[%c0_1, %c0_2] : memref<512x256xbf16, #tpu.memory_space<vmem>>, vector<512x256xbf16>
    %cst = arith.constant dense<0.000000e+00> : vector<16x256xf32>
    %3 = tpu.matmul %1, %2, %cst {dimension_numbers = #tpu.dot_dimension_numbers<[1], [0], [0], [1], [0, 0, 1, 1], [], []>} : vector<16x512xbf16>, vector<512x256xbf16>, vector<16x256xf32> -> vector<16x256xf32>
    %c0_3 = arith.constant 0 : index
    %c0_4 = arith.constant 0 : index
    %4 = vector.load %arg4[%c0_3, %c0_4] : memref<1x256xf32, #tpu.memory_space<vmem>>, vector<1x256xf32>
    %5 = vector.broadcast %4 : vector<1x256xf32> to vector<16x256xf32>
    %6 = arith.addf %3, %5 : vector<16x256xf32>
    %c0_5 = arith.constant 0 : index
    %c0_6 = arith.constant 0 : index
    %7 = vector.load %arg5[%c0_5, %c0_6] : memref<16x256xf32, #tpu.memory_space<vmem>>, vector<16x256xf32>
    tpu.vector_store %arg5[%c0_5, %c0_6], %6 {strides = array<i32>} : memref<16x256xf32, #tpu.memory_space<vmem>>, vector<16x256xf32>,
    return
  }
  func.func @transform_0(%arg0: i32, %arg1: i32) -> (i32, i32) {
    %c0_i32 = arith.constant 0 : i32
    %c0_i32_0 = arith.constant 0 : i32
    return %arg0, %c0_i32 : i32, i32
  }
  func.func @transform_1(%arg0: i32, %arg1: i32) -> (i32, i32) {
    %c0_i32 = arith.constant 0 : i32
    %c0_i32_0 = arith.constant 0 : i32
    return %c0_i32, %arg1 : i32, i32
  }
  func.func @transform_2(%arg0: i32, %arg1: i32) -> (i32, i32) {
    %c0_i32 = arith.constant 0 : i32
    %c0_i32_0 = arith.constant 0 : i32
    return %c0_i32, %arg1 : i32, i32
  }
  func.func @transform_3(%arg0: i32, %arg1: i32) -> (i32, i32) {
    %c0_i32 = arith.constant 0 : i32
    return %arg0, %arg1 : i32, i32
  }
}

</mosaic_0001>

<bundles_post_ra>
// kernel: tpu_custom_call.1
= control target key start
LH: loop header
LB: loop body
LE: loop exit
PB: predicated region body
PF: predicated region fallthrough
CT: control target
= control target key end

     0   :  { %s2006_s0 = inlined_call_operand.hbm [shape: f32[16,512], index: 0, kind: input, shape index: {}]   ;;  %s2007_s1 = inlined_call_operand.hbm [shape: bf16[512,384], index: 1, kind: input, shape index: {}]   ;;  %s2008_s2 = inlined_call_operand.hbm [shape: f32[1,384], index: 2, kind: input, shape index: {}]   ;;  %s2009_s3 = inlined_call_operand.hbm [shape: f32[16,384], index: 3, kind: output, shape index: {}]  }
   0x1   :  { %2014 = sst [smem:[#allocation15_spill]] %s2006_s0 }
   0x2   :  { %8 = vsyncpa [#allocation3], 0 }
   0x3   :  { %9 = vsyncpa [#allocation6], 0 }
   0x4   :  { %11 = vsyncpa [#allocation6 + $0x1], 0 }
   0x5   :  { %12 = vsyncpa [#allocation4], 0 }
   0x6   :  { %14 = vsyncpa [#allocation4 + $0x1], 0  ;;  %s1626_s12 = smov 0   ;;  %s1628_s13 = smov 0  }
   0x7   :  { %s1630_s14 = smov 0   ;;  %s1632_s15 = smov 0  }
   0x8   :  { %s1634_s16 = smov 0   ;;  %s1636_s17 = smov 0  }
   0x9 LB: > { %s1657_s18 = sadd.s32 4294967295, %s1594_s17   ;;  %s960_s19 = sadd.s32 4294967294, %s1594_s17   ;;  %s1594_s17 = sphi %s1636_s17, %s20_s17   ;;  %s1590_s16 = sphi %s1634_s16, %s2036_s16   ;;  %s1586_s15 = sphi %s1632_s15, %s2035_s15   ;;  %s1582_s14 = sphi %s1630_s14, %s2034_s14   ;;  %s1578_s13 = sphi %s1628_s13, %s2033_s13   ;;  %s1574_s12 = sphi %s1626_s12, %s2032_s12  }
   0xa   : > { %s29_s20 = sadd.s32 1, %s1590_s16  ;;  %s65_s21 = sadd.s32 1, %s1582_s14 }
   0xb   : > { %p30_p0 = scmp.ge.s32.totalorder %s29_s20, 2  ;;  %p72_p1 = scmp.ne.s32.totalorder %s1582_s14, %s1578_s13 }
   0xc   : > { %p73_p2 = scmp.eq.s32.totalorder %s1594_s17, 0  ;;  %p78_p3 = scmp.ne.s32.totalorder %s1578_s13, %s1574_s12 }
   0xd   : > { %s2038_s20 = smov (%p30_p0, %s29_s20), 0  ;;  %p2013_p5 = scmp.eq.s32.totalorder %s1657_s18, 0 }
   0xe   : > { %2015 = sst [smem:[#allocation12_spill]] %s2038_s20  ;;  %p1669_p4 = por %p73_p2, %p72_p1 }
   0xf   : > { %s62_s23 = ssub.s32 %s1590_s16, %s2038_s20  ;;  %p130_p6 = scmp.eq.s32.totalorder %s1657_s18, 1 }
  0x10   : > { %p63_p7 = scmp.eq.s32.totalorder %s62_s23, 0  ;;  %p1679_p8 = por %p2013_p5, %p78_p3 }
  0x11   : > { %p1683_p9 = por %p130_p6, %p72_p1  ;;  %p136_p10 = scmp.eq.s32.totalorder %s960_s19, 1 }
  0x12   : > { %s1688_s26 = scalar_select %p63_p7, %s1582_s14, %s65_s21  }
  0x13   : > { %p1690_p11 = por %p136_p10, %p78_p3  ;;  %p961_p12 = scmp.ge.s32.totalorder %s1594_s17, 1 }
  0x14   : > { %2019 = sst [smem:[#allocation13_spill]] %s1688_s26  ;;  %p143_p13 = scmp.lt.s32.totalorder %s1594_s17, 3 }
  0x15   : > { %s2020_s27 = scalar_select %p1690_p11, 1, 0 }
  0x16   : > { %s2022_s0 = sld [smem:[#allocation15_spill]]  ;;  %p1699_p0 = pnand %p961_p12, %p143_p13 }
  0x17   : > { %2021 = sst [smem:[#allocation14_spill]] %s2020_s27  ;;  %s1596_s5 = smov [#allocation2]  }
  0x18   : > { %s160_s6 = sshll.u32 %s1596_s5, 4  ;;  %p1323_p1 = pneg %p1699_p0  ;;  %s161_s6 = int_to_ptr.vmem [resolvable:$true] %s160_s6 }
  0x19   : > { %s1597_s7 = smov 512   ;;  %s1598_s8 = smov 32  }
  0x1a   : > { %p1324_p2 = pnand %p1323_p1, %p2013_p5  ;;  %p2012_p3 = scmp.ge.s32.totalorder %s1594_s17, 2 }
  0x1c   : > { %s158_s30 = sshll.u32 %s2022_s0, 4  ;;  %170 = sbr.rel (%p2012_p3) target bundleno = 93 (0x5d), region = 20  ;;  %s159_s30 = int_to_ptr.hbm [resolvable:$true] %s158_s30 }
  0x1d   : > { %1326 = dma.hbm_to_vmem [thread:$0]  (!%p1324_p2), %s159_s30, 1024, %s161_s6, [#allocation3], %s1597_s7, %s1597_s7, %s1598_s8  }
  0x21   : > { %173 = sbr.rel (!%p1669_p4) target bundleno = 59 (0x3b), region = 24  ;;  %s174_s9 = sand.u32 (%p1669_p4), 1, %s1594_s17  }
  0x22   : > { %s176_s10 = sand.u32 (%p1669_p4), 1, %s1582_s14   ;;  %s965_s19 = sshll.u32 (%p1669_p4), %s1590_s16, 1 }
  0x23   : > { %s964_s11 = sshll.u32 (%p1669_p4), %s176_s10, 9  ;;  %s180_s21 = ssub.s32 (%p1669_p4), 3, %s965_s19 }
  0x24   : > { %p181_p6 = scmp.lt.s32.totalorder (%p1669_p4), %s180_s21, 2  ;;  %s1718_s30 = scalar_lea.sflag (%p1669_p4), [#allocation6], %s174_s9 }
  0x25   : > { %s178_s5 = scalar_lea.vmem (%p1669_p4), [#allocation5], %s964_s11 }
  0x26   : > { %s2040_s21 = smov (!%p181_p6, %s180_s21), 2 }
  0x27   : > { %s966_s23 = sshll.u32 %s2040_s21, 8 }
  0x28   : > { %s184_s28 = ssub.s32 512, %s966_s23 }
  0x29   : > { %s185_s29 = sshll.u32 %s184_s28, 4 }
  0x2a   : > { %186 = vsyncadd %s1718_s30, %s185_s29  ;;  %p1721_p7 = scmp.ne.s32.totalorder %s966_s23, 0  ;;  %s1246_s7 = sshll.u32 %s1590_s16, 3 }
  0x2b   : > { %s189_s19 = scalar_lea.hbm %s2007_s1, %s1246_s7  ;;  %s969_s0 = sshll.u32 %s2040_s21, 2 }
  0x2c   : > { %s192_s28 = sshll.u32 %s189_s19, 4  ;;  %s194_s9 = sshll.u32 %s178_s5, 4  ;;  %s193_s28 = int_to_ptr.hbm [resolvable:$true] %s192_s28  ;;  %s195_s9 = int_to_ptr.vmem [resolvable:$true] %s194_s9 }
  0x2d   : > { %s1248_s11 = sshll.u32 %s2040_s21, 12  ;;  %s1438_s20 = sshra.s32 %s195_s9, 4  ;;  %s1439_s20 = int_to_ptr.vmem [resolvable:$true] %s1438_s20 }
  0x2e   : > { %s1421_s29 = sshrl.u32 %s1248_s11, 4  ;;  %s1599_s23 = smov [#allocation5]  }
  0x2f   : > { %s1445_s26 = scalar_lea.vmem %s1439_s20, %s1421_s29  ;;  %s1449_s27 = scalar_lea.vmem %s1599_s23, 1024 }
  0x30   : > { %p1446_p10 = scmp.ne.s32.totalorder %s1439_s20, %s1445_s26  ;;  %p1451_p1 = scmp.lt.s32.totalorder %s1449_s27, %s1445_s26 }
  0x32   : > { %p1447_p12 = pnand %p1446_p10, %p1721_p7 }
  0x34   : > { %p1448_p13 = pneg %p1447_p12 }
  0x36   : > { %p1453_p2 = pnand %p1451_p1, %p1448_p13 }
  0x38   : > { %1456 = shalt.err (!%p1453_p2)
}
  0x39   : > { %s1600_s7 = smov 192   ;;  %s1601_s5 = smov 128  }
  0x3a   : > { %200 = dma.hbm_to_vmem [thread:$0]  (%p1721_p7), %s193_s28, %s1248_s11, %s195_s9, %s1718_s30, %s1600_s7, %s1601_s5, %s969_s0  }
  0x3b PF: > { %203 = sbr.rel (!%p1669_p4) target bundleno = 93 (0x5d), region = 28  ;;  %s204_s20 = sand.u32 (%p1669_p4), 1, %s1594_s17  }
  0x3c   : > { %s206_s21 = sand.u32 (%p1669_p4), 1, %s1582_s14   ;;  %s973_s10 = sshll.u32 (%p1669_p4), %s1590_s16, 1 }
  0x3d   : > { %s972_s8 = sshll.u32 (%p1669_p4), %s206_s21, 1  ;;  %s210_s26 = ssub.s32 (%p1669_p4), 3, %s973_s10 }
  0x3e   : > { %p211_p6 = scmp.lt.s32.totalorder (%p1669_p4), %s210_s26, 2  ;;  %s1744_s6 = scalar_lea.sflag (%p1669_p4), [#allocation6], %s204_s20 }
  0x3f   : > { %s208_s0 = scalar_lea.vmem (%p1669_p4), [#allocation7], %s972_s8 }
  0x40   : > { %s2042_s26 = smov (!%p211_p6, %s210_s26), 2 }
  0x41   : > { %s213_s27 = ssub.s32 2, %s2042_s26 }
  0x42   : > { %s214_s19 = sshll.u32 %s213_s27, 4 }
  0x43   : > { %215 = vsyncadd %s1744_s6, %s214_s19  ;;  %p974_p4 = scmp.ne.s32.totalorder %s2042_s26, 0  ;;  %s217_s28 = scalar_lea.hbm %s2008_s2, %s973_s10 }
  0x44   : > { %s218_s9 = sshll.u32 %s2042_s26, 4  ;;  %s219_s11 = sshll.u32 %s217_s28, 4  ;;  %s220_s11 = int_to_ptr.hbm [resolvable:$true] %s219_s11 }
  0x45   : > { %s221_s29 = sshll.u32 %s208_s0, 4  ;;  %s1458_s23 = sshra.s32 %s220_s11, 4  ;;  %s222_s29 = int_to_ptr.vmem [resolvable:$true] %s221_s29  ;;  %s1459_s23 = int_to_ptr.hbm [resolvable:$true] %s1458_s23 }
  0x46   : > { %s1460_s7 = sshrl.u32 %s218_s9, 4  ;;  %s1469_s8 = scalar_lea.hbm %s2008_s2, 3 }
  0x47   : > { %s1465_s5 = scalar_lea.hbm %s1459_s23, %s1460_s7 }
  0x48   : > { %p1466_p7 = scmp.ne.s32.totalorder %s1459_s23, %s1465_s5  ;;  %p1471_p13 = scmp.lt.s32.totalorder %s1469_s8, %s1465_s5 }
  0x4a   : > { %p1467_p10 = pnand %p1466_p7, %p974_p4 }
  0x4c   : > { %p1468_p12 = pneg %p1467_p10 }
  0x4e   : > { %p1473_p1 = pnand %p1471_p13, %p1468_p12 }
  0x50   : > { %1476 = shalt.err (!%p1473_p1)
}
  0x51   : > { %s1477_s10 = sshra.s32 %s222_s29, 4  ;;  %s1602_s19 = smov [#allocation7]   ;;  %s1478_s10 = int_to_ptr.vmem [resolvable:$true] %s1477_s10 }
  0x52   : > { %s1484_s27 = scalar_lea.vmem %s1478_s10, %s1460_s7  ;;  %s1488_s0 = scalar_lea.vmem %s1602_s19, 4 }
  0x53   : > { %p1485_p2 = scmp.ne.s32.totalorder %s1478_s10, %s1484_s27  ;;  %p1490_p5 = scmp.lt.s32.totalorder %s1488_s0, %s1484_s27 }
  0x55   : > { %p1486_p6 = pnand %p1485_p2, %p974_p4 }
  0x57   : > { %p1487_p3 = pneg %p1486_p6 }
  0x59   : > { %p1492_p7 = pnand %p1490_p5, %p1487_p3 }
  0x5b   : > { %1495 = shalt.err (!%p1492_p7)
}
  0x5c   : > { %224 = dma.hbm_to_vmem [thread:$0]  (%p974_p4), %s220_s11, %s218_s9, %s222_s29, %s1744_s6  }
  0x5d PF: > { %230 = sbr.rel (%p1699_p0) target bundleno = 348 (0x15c), region = 32  ;;  %p2025_p10 = scmp.eq.s32.totalorder (!%p1699_p0), %s1657_s18, 0 }
  0x62   : > { %1561 = dma.done.wait (%p2025_p10), [#allocation3], 1024   ;;  %p2026_p12 = pmov %p2025_p10 }
  0x63   : > { %s237_s22 = sand.u32 1, %s1657_s18   ;;  %s1774_s30 = sand.u32 1, %s1578_s13  }
  0x64   : > { %1563 = vsyncadd (%p2026_p12), [#allocation3], 4294966272  ;;  %s977_s26 = sshll.u32 %s1774_s30, 9  ;;  %s238_s6 = scalar_lea.sflag [#allocation6], %s237_s22 }
  0x65   : > { %s1777_s28 = scalar_lea.vmem [#allocation5], %s977_s26 }
  0x66   : > { %1565 = dma.done.wait (%p1679_p8), %s238_s6, 8224  }
  0x67   : > { %1567 = vsyncadd (%p1679_p8), %s238_s6, 4294959072  ;;  %v1038_v0 = vld [vmem:[%s1777_s28 + $0x70] sm:$0xf]  ;;  %v1264_v1 = vld [vmem:[%s1777_s28 + $0x74] sm:$0xf0]  ;;  %s978_s18 = sshll.u32 %s1774_s30, 1 }
  0x68   : > { %v1102_v2 = vld [vmem:[%s1777_s28 + $0xf0] sm:$0xf]  ;;  %v1039_v3 = vor.u32 %v1264_v1, %v1038_v0  ;;  %v1280_v4 = vld [vmem:[%s1777_s28 + $0xf4] sm:$0xf0]  ;;  %v1030_v11 = vld [vmem:[%s1777_s28 + $0x60] sm:$0xf] }
  0x69   : > { %v1166_v5 = vld [vmem:[%s1777_s28 + $0x170] sm:$0xf]  ;;  %v1296_v6 = vld [vmem:[%s1777_s28 + $0x174] sm:$0xf0]  ;;  %v1103_v7 = vor.u32 %v1280_v4, %v1102_v2  ;;  %v1262_v13 = vld [vmem:[%s1777_s28 + $0x64] sm:$0xf0] }
  0x6a   : > { %v1167_v8 = vor.u32 %v1296_v6, %v1166_v5  ;;  %v1230_v9 = vld [vmem:[%s1777_s28 + $0x1f0] sm:$0xf]  ;;  %v1312_v10 = vld [vmem:[%s1777_s28 + $0x1f4] sm:$0xf0]  ;;  %698 = vmatpush.bf16.msra.mxu0 %v1039_v3  ;;  %v1094_v14 = vld [vmem:[%s1777_s28 + $0xe0] sm:$0xf]  ;;  %v1031_v16 = vor.u32 %v1262_v13, %v1030_v11 }
  0x6b   : > { %v1231_v12 = vor.u32 %v1312_v10, %v1230_v9  ;;  %v1278_v15 = vld [vmem:[%s1777_s28 + $0xe4] sm:$0xf0]  ;;  %712 = vmatpush.bf16.msra.mxu1 %v1103_v7  ;;  %v1158_v18 = vld [vmem:[%s1777_s28 + $0x160] sm:$0xf]  ;;  %v1022_v23 = vld [vmem:[%s1777_s28 + $0x50] sm:$0xf] }
  0x6c   : > { %726 = vmatpush.bf16.msra.mxu2 %v1167_v8  ;;  %v1095_v17 = vor.u32 %v1278_v15, %v1094_v14  ;;  %v1294_v19 = vld [vmem:[%s1777_s28 + $0x164] sm:$0xf0]  ;;  %v1222_v20 = vld [vmem:[%s1777_s28 + $0x1e0] sm:$0xf]  ;;  %v1260_v24 = vld [vmem:[%s1777_s28 + $0x54] sm:$0xf0] }
  0x6d   : > { %740 = vmatpush.bf16.msra.mxu3 %v1231_v12  ;;  %v1159_v21 = vor.u32 %v1294_v19, %v1158_v18  ;;  %v1310_v22 = vld [vmem:[%s1777_s28 + $0x1e4] sm:$0xf0]  ;;  %v1086_v26 = vld [vmem:[%s1777_s28 + $0xd0] sm:$0xf]  ;;  %v1276_v27 = vld [vmem:[%s1777_s28 + $0xd4] sm:$0xf0]  ;;  %v1023_v29 = vor.u32 %v1260_v24, %v1022_v23 }
  0x6e   : > { %v1223_v25 = vor.u32 %v1310_v22, %v1222_v20  ;;  %v1150_v28 = vld [vmem:[%s1777_s28 + $0x150] sm:$0xf]  ;;  %699 = vmatpush.bf16.msra.mxu0 %v1031_v16  ;;  %v1292_v30 = vld [vmem:[%s1777_s28 + $0x154] sm:$0xf0]  ;;  %v1087_v33 = vor.u32 %v1276_v27, %v1086_v26  ;;  %v1014_v35 = vld [vmem:[%s1777_s28 + $0x40] sm:$0xf] }
  0x6f   : > { %v1214_v31 = vld [vmem:[%s1777_s28 + $0x1d0] sm:$0xf]  ;;  %v1308_v32 = vld [vmem:[%s1777_s28 + $0x1d4] sm:$0xf0]  ;;  %713 = vmatpush.bf16.msra.mxu1 %v1095_v17  ;;  %v1151_v34 = vor.u32 %v1292_v30, %v1150_v28  ;;  %v1258_v36 = vld [vmem:[%s1777_s28 + $0x44] sm:$0xf0] }
  0x70   : > { %727 = vmatpush.bf16.msra.mxu2 %v1159_v21  ;;  %v1078_v37 = vld [vmem:[%s1777_s28 + $0xc0] sm:$0xf]  ;;  %v1215_v38 = vor.u32 %v1308_v32, %v1214_v31  ;;  %v1274_v39 = vld [vmem:[%s1777_s28 + $0xc4] sm:$0xf0]  ;;  %v1015_v44 = vor.u32 %v1258_v36, %v1014_v35  ;;  %v1006_v47 = vld [vmem:[%s1777_s28 + $0x30] sm:$0xf] }
  0x71   : > { %741 = vmatpush.bf16.msra.mxu3 %v1223_v25  ;;  %v1142_v40 = vld [vmem:[%s1777_s28 + $0x140] sm:$0xf]  ;;  %v1290_v41 = vld [vmem:[%s1777_s28 + $0x144] sm:$0xf0]  ;;  %v1079_v45 = vor.u32 %v1274_v39, %v1078_v37  ;;  %v1256_v48 = vld [vmem:[%s1777_s28 + $0x34] sm:$0xf0] }
  0x72   : > { %v1206_v42 = vld [vmem:[%s1777_s28 + $0x1c0] sm:$0xf]  ;;  %v1306_v43 = vld [vmem:[%s1777_s28 + $0x1c4] sm:$0xf0]  ;;  %700 = vmatpush.bf16.msra.mxu0 %v1023_v29  ;;  %v1143_v46 = vor.u32 %v1290_v41, %v1142_v40  ;;  %v1070_v49 = vld [vmem:[%s1777_s28 + $0xb0] sm:$0xf]  ;;  %v1007_v56 = vor.u32 %v1256_v48, %v1006_v47 }
  0x73   : > { %714 = vmatpush.bf16.msra.mxu1 %v1087_v33  ;;  %v1207_v50 = vor.u32 %v1306_v43, %v1206_v42  ;;  %v1272_v51 = vld [vmem:[%s1777_s28 + $0xb4] sm:$0xf0]  ;;  %v1134_v52 = vld [vmem:[%s1777_s28 + $0x130] sm:$0xf]  ;;  %v998_v59 = vld [vmem:[%s1777_s28 + $0x20] sm:$0xf] }
  0x74   : > { %728 = vmatpush.bf16.msra.mxu2 %v1151_v34  ;;  %v1288_v53 = vld [vmem:[%s1777_s28 + $0x134] sm:$0xf0]  ;;  %v1198_v54 = vld [vmem:[%s1777_s28 + $0x1b0] sm:$0xf]  ;;  %v1071_v57 = vor.u32 %v1272_v51, %v1070_v49  ;;  %v1254_v60 = vld [vmem:[%s1777_s28 + $0x24] sm:$0xf0] }
  0x75   : > { %742 = vmatpush.bf16.msra.mxu3 %v1215_v38  ;;  %v1304_v55 = vld [vmem:[%s1777_s28 + $0x1b4] sm:$0xf0]  ;;  %v1135_v58 = vor.u32 %v1288_v53, %v1134_v52  ;;  %v1062_v61 = vld [vmem:[%s1777_s28 + $0xa0] sm:$0xf]  ;;  %v1270_v63 = vld [vmem:[%s1777_s28 + $0xa4] sm:$0xf0]  ;;  %v999_v4 = vor.u32 %v1254_v60, %v998_v59 }
  0x76   : > { %701 = vmatpush.bf16.msra.mxu0 %v1015_v44  ;;  %v1199_v62 = vor.u32 %v1304_v55, %v1198_v54  ;;  %v1126_v0 = vld [vmem:[%s1777_s28 + $0x120] sm:$0xf]  ;;  %v1286_v1 = vld [vmem:[%s1777_s28 + $0x124] sm:$0xf0]  ;;  %v1063_v5 = vor.u32 %v1270_v63, %v1062_v61  ;;  %v990_v7 = vld [vmem:[%s1777_s28 + $0x10] sm:$0xf] }
  0x77   : > { %715 = vmatpush.bf16.msra.mxu1 %v1079_v45  ;;  %v1190_v2 = vld [vmem:[%s1777_s28 + $0x1a0] sm:$0xf]  ;;  %v1302_v3 = vld [vmem:[%s1777_s28 + $0x1a4] sm:$0xf0]  ;;  %v1127_v6 = vor.u32 %v1286_v1, %v1126_v0  ;;  %v1252_v8 = vld [vmem:[%s1777_s28 + $0x14] sm:$0xf0] }
  0x78   : > { %729 = vmatpush.bf16.msra.mxu2 %v1143_v46  ;;  %v1054_v9 = vld [vmem:[%s1777_s28 + $0x90] sm:$0xf]  ;;  %v1191_v10 = vor.u32 %v1302_v3, %v1190_v2  ;;  %v1268_v11 = vld [vmem:[%s1777_s28 + $0x94] sm:$0xf0]  ;;  %v982_v16 = vld [vmem:[%s1777_s28] sm:$0xf]  ;;  %v991_v17 = vor.u32 %v1252_v8, %v990_v7 }
  0x79   : > { %743 = vmatpush.bf16.msra.mxu3 %v1207_v50  ;;  %v1118_v12 = vld [vmem:[%s1777_s28 + $0x110] sm:$0xf]  ;;  %v1284_v13 = vld [vmem:[%s1777_s28 + $0x114] sm:$0xf0]  ;;  %v1250_v18 = vld [vmem:[%s1777_s28 + $0x4] sm:$0xf0]  ;;  %v1055_v21 = vor.u32 %v1268_v11, %v1054_v9 }
  0x7a   : > { %702 = vmatpush.bf16.msra.mxu0 %v1007_v56  ;;  %v1182_v14 = vld [vmem:[%s1777_s28 + $0x190] sm:$0xf]  ;;  %v1300_v15 = vld [vmem:[%s1777_s28 + $0x194] sm:$0xf0]  ;;  %v1046_v19 = vld [vmem:[%s1777_s28 + $0x80] sm:$0xf]  ;;  %v1119_v22 = vor.u32 %v1284_v13, %v1118_v12  ;;  %v983_v33 = vor.u32 %v1250_v18, %v982_v16 }
  0x7b   : > { %716 = vmatpush.bf16.msra.mxu1 %v1071_v57  ;;  %v1266_v20 = vld [vmem:[%s1777_s28 + $0x84] sm:$0xf0]  ;;  %v1110_v23 = vld [vmem:[%s1777_s28 + $0x100] sm:$0xf]  ;;  %v1183_v26 = vor.u32 %v1300_v15, %v1182_v14  ;;  %v1263_v28 = vld [vmem:[%s1777_s28 + $0x74] sm:$0xf] }
  0x7c   : > { %730 = vmatpush.bf16.msra.mxu2 %v1135_v58  ;;  %v1282_v24 = vld [vmem:[%s1777_s28 + $0x104] sm:$0xf0]  ;;  %v1174_v25 = vld [vmem:[%s1777_s28 + $0x180] sm:$0xf]  ;;  %v1040_v29 = vld [vmem:[%s1777_s28 + $0x78] sm:$0xf0]  ;;  %v1047_v37 = vor.u32 %v1266_v20, %v1046_v19 }
  0x7d   : > { %744 = vmatpush.bf16.msra.mxu3 %v1199_v62  ;;  %v1298_v27 = vld [vmem:[%s1777_s28 + $0x184] sm:$0xf0]  ;;  %v1279_v30 = vld [vmem:[%s1777_s28 + $0xf4] sm:$0xf]  ;;  %v1104_v31 = vld [vmem:[%s1777_s28 + $0xf8] sm:$0xf0]  ;;  %v1111_v38 = vor.u32 %v1282_v24, %v1110_v23  ;;  %v1043_v44 = vor.u32 %v1263_v28, %v1040_v29 }
  0x7e   : > { %703 = vmatpush.bf16.msra.mxu0 %v999_v4  ;;  %v1295_v32 = vld [vmem:[%s1777_s28 + $0x174] sm:$0xf]  ;;  %v1168_v34 = vld [vmem:[%s1777_s28 + $0x178] sm:$0xf0]  ;;  %v1261_v39 = vld [vmem:[%s1777_s28 + $0x64] sm:$0xf]  ;;  %v1175_v43 = vor.u32 %v1298_v27, %v1174_v25  ;;  %v1107_v49 = vor.u32 %v1279_v30, %v1104_v31 }
  0x7f   : > { %717 = vmatpush.bf16.msra.mxu1 %v1063_v5  ;;  %v1311_v35 = vld [vmem:[%s1777_s28 + $0x1f4] sm:$0xf]  ;;  %v1232_v36 = vld [vmem:[%s1777_s28 + $0x1f8] sm:$0xf0]  ;;  %v1032_v40 = vld [vmem:[%s1777_s28 + $0x68] sm:$0xf0]  ;;  %v1171_v50 = vor.u32 %v1295_v32, %v1168_v34 }
  0x80   : > { %731 = vmatpush.bf16.msra.mxu2 %v1127_v6  ;;  %v298_v41 = vld [vmem:[#allocation2 + $0x10] sm:$0xff]  ;;  %v1277_v45 = vld [vmem:[%s1777_s28 + $0xe4] sm:$0xf]  ;;  %v1096_v46 = vld [vmem:[%s1777_s28 + $0xe8] sm:$0xf0]  ;;  %v1235_v54 = vor.u32 %v1311_v35, %v1232_v36  ;;  %v1035_v63 = vor.u32 %v1261_v39, %v1032_v40  ;;  %s251_s24 = scalar_lea.vmem [#allocation7], %s978_s18 }
  0x81   : > { %745 = vmatpush.bf16.msra.mxu3 %v1191_v10  ;;  %v302_v42 = vld [vmem:[#allocation2 + $0x30] sm:$0xff]  ;;  %v1293_v47 = vld [vmem:[%s1777_s28 + $0x164] sm:$0xf]  ;;  %v1160_v48 = vld [vmem:[%s1777_s28 + $0x168] sm:$0xf0]  ;;  %v1099_v1 = vor.u32 %v1277_v45, %v1096_v46  ;;  %s979_s4 = sshll.u32 %s1774_s30, 5 }
  0x82   : > { %704 = vmatpush.bf16.msra.mxu0 %v991_v17  ;;  %v296_v51 = vld [vmem:[#allocation2] sm:$0xff]  ;;  %v299_v53 = vld [vmem:[#allocation2 + $0x18] sm:$0xff]  ;;  %v1861_v55 = vpack.c.bf16 %v302_v42, %v298_v41  ;;  %v297_v57 = vld [vmem:[#allocation2 + $0x8] sm:$0xff]  ;;  %v1163_v2 = vor.u32 %v1293_v47, %v1160_v48  ;;  %s1929_s9 = scalar_lea.vmem [#allocation8], %s979_s4  ;;  %s815_s11 = scalar_lea.sflag [#allocation4], %s1774_s30 }
  0x83   : > { %718 = vmatpush.bf16.msra.mxu1 %v1055_v21  ;;  %v300_v52 = vld [vmem:[#allocation2 + $0x20] sm:$0xff]  ;;  %v303_v56 = vld [vmem:[#allocation2 + $0x38] sm:$0xff]  ;;  %v301_v58 = vld [vmem:[#allocation2 + $0x28] sm:$0xff]  ;;  %s1237_s29 = sshll.u32 (%p1683_p9), %s1586_s15, 1 }
  0x84   : > { %732 = vmatpush.bf16.msra.mxu2 %v1119_v22  ;;  %v1309_v59 = vld [vmem:[%s1777_s28 + $0x1e4] sm:$0xf]  ;;  %v1224_v60 = vld [vmem:[%s1777_s28 + $0x1e8] sm:$0xf0]  ;;  %v1865_v61 = vpack.c.bf16 %v300_v52, %v296_v51  ;;  %v1867_v62 = vpack.c.bf16 %v303_v56, %v299_v53  ;;  %v1869_v0 = vpack.c.bf16 %v301_v58, %v297_v57  ;;  %v1259_v3 = vld [vmem:[%s1777_s28 + $0x54] sm:$0xf] }
  0x85   : > { %746 = vmatpush.bf16.msra.mxu3 %v1183_v26  ;;  %v1024_v4 = vld [vmem:[%s1777_s28 + $0x58] sm:$0xf0]  ;;  %v1275_v5 = vld [vmem:[%s1777_s28 + $0xd4] sm:$0xf]  ;;  %v1227_v6 = vor.u32 %v1309_v59, %v1224_v60  ;;  %v1257_v15 = vld [vmem:[%s1777_s28 + $0x44] sm:$0xf] }
  0x86   : > { %705 = vmatpush.bf16.msra.mxu0 %v983_v33  ;;  %v1088_v7 = vld [vmem:[%s1777_s28 + $0xd8] sm:$0xf0]  ;;  %v1291_v8 = vld [vmem:[%s1777_s28 + $0x154] sm:$0xf]  ;;  %v1027_v12 = vor.u32 %v1259_v3, %v1024_v4  ;;  %v1016_v16 = vld [vmem:[%s1777_s28 + $0x48] sm:$0xf0] }
  0x87   : > { %719 = vmatpush.bf16.msra.mxu1 %v1047_v37  ;;  %v1152_v9 = vld [vmem:[%s1777_s28 + $0x158] sm:$0xf0]  ;;  %v1307_v10 = vld [vmem:[%s1777_s28 + $0x1d4] sm:$0xf]  ;;  %v1091_v13 = vor.u32 %v1275_v5, %v1088_v7  ;;  %v1273_v17 = vld [vmem:[%s1777_s28 + $0xc4] sm:$0xf]  ;;  %v1019_v24 = vor.u32 %v1257_v15, %v1016_v16 }
  0x88   : > { %733 = vmatpush.bf16.msra.mxu2 %v1111_v38  ;;  %v1216_v11 = vld [vmem:[%s1777_s28 + $0x1d8] sm:$0xf0]  ;;  %v1155_v14 = vor.u32 %v1291_v8, %v1152_v9  ;;  %v1080_v19 = vld [vmem:[%s1777_s28 + $0xc8] sm:$0xf0]  ;;  %v1289_v20 = vld [vmem:[%s1777_s28 + $0x144] sm:$0xf] }
  0x89   : > { %747 = vmatpush.bf16.msra.mxu3 %v1175_v43  ;;  %706 = vmatmul.bf16.vlgmr.msra.gmra.mxu0 %v1865_v61  ;;  %v1219_v18 = vor.u32 %v1307_v10, %v1216_v11  ;;  %v1144_v21 = vld [vmem:[%s1777_s28 + $0x148] sm:$0xf0]  ;;  %v1305_v22 = vld [vmem:[%s1777_s28 + $0x1c4] sm:$0xf]  ;;  %v1083_v25 = vor.u32 %v1273_v17, %v1080_v19  ;;  %v1255_v27 = vld [vmem:[%s1777_s28 + $0x34] sm:$0xf] }
  0x8a   : > { %754 = vmatpush.bf16.msrb.mxu0 %v1043_v44  ;;  %720 = vmatmul.bf16.vlgmr.msra.gmra.mxu1 %v1869_v0  ;;  %v1208_v23 = vld [vmem:[%s1777_s28 + $0x1c8] sm:$0xf0]  ;;  %v1147_v26 = vor.u32 %v1289_v20, %v1144_v21  ;;  %v1008_v28 = vld [vmem:[%s1777_s28 + $0x38] sm:$0xf0]  ;;  %v1271_v29 = vld [vmem:[%s1777_s28 + $0xb4] sm:$0xf] }
  0x8b   : > { %768 = vmatpush.bf16.msrb.mxu1 %v1107_v49  ;;  %734 = vmatmul.bf16.vlgmr.msra.gmra.mxu2 %v1861_v55  ;;  %v1211_v30 = vor.u32 %v1305_v22, %v1208_v23  ;;  %v1072_v31 = vld [vmem:[%s1777_s28 + $0xb8] sm:$0xf0]  ;;  %v1287_v32 = vld [vmem:[%s1777_s28 + $0x134] sm:$0xf]  ;;  %v1011_v36 = vor.u32 %v1255_v27, %v1008_v28  ;;  %v1253_v39 = vld [vmem:[%s1777_s28 + $0x24] sm:$0xf] }
  0x8c   : > { %782 = vmatpush.bf16.msrb.mxu2 %v1171_v50  ;;  %748 = vmatmul.bf16.vlgmr.msra.gmra.mxu3 %v1867_v62  ;;  %v1136_v33 = vld [vmem:[%s1777_s28 + $0x138] sm:$0xf0]  ;;  %v1303_v34 = vld [vmem:[%s1777_s28 + $0x1b4] sm:$0xf]  ;;  %v1075_v37 = vor.u32 %v1271_v29, %v1072_v31  ;;  %v1000_v40 = vld [vmem:[%s1777_s28 + $0x28] sm:$0xf0] }
  0x8d   : > { %796 = vmatpush.bf16.msrb.mxu3 %v1235_v54  ;;  %v1200_v35 = vld [vmem:[%s1777_s28 + $0x1b8] sm:$0xf0]  ;;  %v1139_v38 = vor.u32 %v1287_v32, %v1136_v33  ;;  %v1269_v41 = vld [vmem:[%s1777_s28 + $0xa4] sm:$0xf]  ;;  %v1064_v43 = vld [vmem:[%s1777_s28 + $0xa8] sm:$0xf0]  ;;  %v1003_v48 = vor.u32 %v1253_v39, %v1000_v40 }
  0x8e   : > { %755 = vmatpush.bf16.msrb.mxu0 %v1035_v63  ;;  %v1203_v42 = vor.u32 %v1303_v34, %v1200_v35  ;;  %v1285_v44 = vld [vmem:[%s1777_s28 + $0x124] sm:$0xf]  ;;  %v1128_v45 = vld [vmem:[%s1777_s28 + $0x128] sm:$0xf0]  ;;  %v1067_v49 = vor.u32 %v1269_v41, %v1064_v43  ;;  %v1251_v51 = vld [vmem:[%s1777_s28 + $0x14] sm:$0xf] }
  0x8f   : > { %769 = vmatpush.bf16.msrb.mxu1 %v1099_v1  ;;  %v1301_v46 = vld [vmem:[%s1777_s28 + $0x1a4] sm:$0xf]  ;;  %v1192_v47 = vld [vmem:[%s1777_s28 + $0x1a8] sm:$0xf0]  ;;  %v1131_v50 = vor.u32 %v1285_v44, %v1128_v45  ;;  %v992_v52 = vld [vmem:[%s1777_s28 + $0x18] sm:$0xf0] }
  0x90   : > { %783 = vmatpush.bf16.msrb.mxu2 %v1163_v2  ;;  %v1267_v53 = vld [vmem:[%s1777_s28 + $0x94] sm:$0xf]  ;;  %v1195_v54 = vor.u32 %v1301_v46, %v1192_v47  ;;  %v1056_v56 = vld [vmem:[%s1777_s28 + $0x98] sm:$0xf0]  ;;  %v995_v63 = vor.u32 %v1251_v51, %v992_v52  ;;  %v1249_v3 = vld [vmem:[%s1777_s28 + $0x4] sm:$0xf] }
  0x91   : > { %797 = vmatpush.bf16.msrb.mxu3 %v1227_v6  ;;  %v1283_v57 = vld [vmem:[%s1777_s28 + $0x114] sm:$0xf]  ;;  %v1120_v58 = vld [vmem:[%s1777_s28 + $0x118] sm:$0xf0]  ;;  %v1059_v1 = vor.u32 %v1267_v53, %v1056_v56  ;;  %v984_v4 = vld [vmem:[%s1777_s28 + $0x8] sm:$0xf0] }
  0x92   : > { %756 = vmatpush.bf16.msrb.mxu0 %v1027_v12  ;;  %v1299_v59 = vld [vmem:[%s1777_s28 + $0x194] sm:$0xf]  ;;  %v1184_v60 = vld [vmem:[%s1777_s28 + $0x198] sm:$0xf0]  ;;  %v1123_v2 = vor.u32 %v1283_v57, %v1120_v58  ;;  %v1265_v5 = vld [vmem:[%s1777_s28 + $0x84] sm:$0xf]  ;;  %v987_v12 = vor.u32 %v1249_v3, %v984_v4 }
  0x93   : > { %770 = vmatpush.bf16.msrb.mxu1 %v1091_v13  ;;  %v1187_v6 = vor.u32 %v1299_v59, %v1184_v60  ;;  %v1048_v7 = vld [vmem:[%s1777_s28 + $0x88] sm:$0xf0]  ;;  %v1281_v8 = vld [vmem:[%s1777_s28 + $0x104] sm:$0xf]  ;;  %v372_v16 = vld [vmem:[%s251_s24] sm:$0x3] }
  0x94   : > { %784 = vmatpush.bf16.msrb.mxu2 %v1155_v14  ;;  %v1112_v9 = vld [vmem:[%s1777_s28 + $0x108] sm:$0xf0]  ;;  %v1297_v10 = vld [vmem:[%s1777_s28 + $0x184] sm:$0xf]  ;;  %v1051_v13 = vor.u32 %v1265_v5, %v1048_v7  ;;  %v374_v17 = vperm.slane %v372_v16, 0  ;;  %s824_s23 = ssub.s32 (%p1683_p9), 3, %s1237_s29 }
  0x95   : > { %798 = vmatpush.bf16.msrb.mxu3 %v1219_v18  ;;  %v1176_v11 = vld [vmem:[%s1777_s28 + $0x188] sm:$0xf0]  ;;  %v1115_v14 = vor.u32 %v1281_v8, %v1112_v9  ;;  %p825_p5 = scmp.lt.s32.totalorder (%p1683_p9), %s824_s23, 2 }
  0x96   : > { %757 = vmatpush.bf16.msrb.mxu0 %v1019_v24  ;;  %v1179_v15 = vor.u32 %v1297_v10, %v1176_v11 }
  0x97   : > { %771 = vmatpush.bf16.msrb.mxu1 %v1083_v25 }
  0x98   : > { %785 = vmatpush.bf16.msrb.mxu2 %v1147_v26 }
  0x99   : > { %799 = vmatpush.bf16.msrb.mxu3 %v1211_v30  ;;  %v375_v30 = vperm.slane %v372_v16, 1 }
  0x9a   : > { %758 = vmatpush.bf16.msrb.mxu0 %v1011_v36 }
  0x9b   : > { %772 = vmatpush.bf16.msrb.mxu1 %v1075_v37 }
  0x9c   : > { %786 = vmatpush.bf16.msrb.mxu2 %v1139_v38 }
  0x9d   : > { %800 = vmatpush.bf16.msrb.mxu3 %v1203_v42 }
  0x9e   : > { %759 = vmatpush.bf16.msrb.mxu0 %v1003_v48 }
  0x9f   : > { %773 = vmatpush.bf16.msrb.mxu1 %v1067_v49 }
  0xa0   : > { %787 = vmatpush.bf16.msrb.mxu2 %v1131_v50 }
  0xa1   : > { %801 = vmatpush.bf16.msrb.mxu3 %v1195_v54 }
  0xa2   : > { %760 = vmatpush.bf16.msrb.mxu0 %v995_v63 }
  0xa3   : > { %774 = vmatpush.bf16.msrb.mxu1 %v1059_v1 }
  0xa4   : > { %788 = vmatpush.bf16.msrb.mxu2 %v1123_v2 }
  0xa5   : > { %802 = vmatpush.bf16.msrb.mxu3 %v1187_v6 }
  0xa6   : > { %761 = vmatpush.bf16.msrb.mxu0 %v987_v12 }
  0xa7   : > { %775 = vmatpush.bf16.msrb.mxu1 %v1051_v13 }
  0xa8   : > { %789 = vmatpush.bf16.msrb.mxu2 %v1115_v14 }
  0xa9   : > { %803 = vmatpush.bf16.msrb.mxu3 %v1179_v15  ;;  %762 = vmatmul.bf16.vlgmr.msrb.gmra.mxu0 %v1865_v61 }
  0xaa   : > { %776 = vmatmul.bf16.vlgmr.msrb.gmra.mxu1 %v1869_v0 }
  0xab   : > { %790 = vmatmul.bf16.vlgmr.msrb.gmra.mxu2 %v1861_v55 }
  0xac   : > { %804 = vmatmul.bf16.vlgmr.msrb.gmra.mxu3 %v1867_v62 }
 0x106   : > { %v707_v18 = vpop.f32.mrf.mxu0 }
 0x107   : > { %v708_v19 = vadd.f32 %v707_v18, %v374_v17  ;;  %v721_v20 = vpop.f32.mrf.mxu1 }
 0x109   : > { %v722_v21 = vadd.f32 %v721_v20, %v708_v19 }
 0x10e   : > { %v735_v22 = vpop.f32.mrf.mxu2  ;;  %v709_v61 = vpop.f32.mrf.mxu0 }
 0x10f   : > { %v736_v23 = vadd.f32 %v735_v22, %v722_v21  ;;  %v749_v24 = vpop.f32.mrf.mxu3  ;;  %v710_v26 = vadd.f32 %v709_v61, %v374_v17  ;;  %v723_v0 = vpop.f32.mrf.mxu1 }
 0x111   : > { %v750_v25 = vadd.f32 %v749_v24, %v736_v23  ;;  %v724_v55 = vadd.f32 %v723_v0, %v710_v26 }
 0x113   : > { %810 = vst [vmem:[%s1929_s9] sm:$0xff] %v750_v25 }
 0x116   : > { %v737_v62 = vpop.f32.mrf.mxu2 }
 0x117   : > { %v738_v27 = vadd.f32 %v737_v62, %v724_v55  ;;  %v751_v28 = vpop.f32.mrf.mxu3 }
 0x119   : > { %v752_v29 = vadd.f32 %v751_v28, %v738_v27 }
 0x11b   : > { %812 = vst [vmem:[%s1929_s9 + $0x10] sm:$0xff] %v752_v29 }
 0x126   : > { %v763_v31 = vpop.f32.mrf.mxu0 }
 0x127   : > { %v764_v32 = vadd.f32 %v763_v31, %v375_v30  ;;  %v777_v33 = vpop.f32.mrf.mxu1 }
 0x129   : > { %v778_v34 = vadd.f32 %v777_v33, %v764_v32 }
 0x12e   : > { %v791_v35 = vpop.f32.mrf.mxu2  ;;  %v765_v38 = vpop.f32.mrf.mxu0 }
 0x12f   : > { %v792_v36 = vadd.f32 %v791_v35, %v778_v34  ;;  %v805_v37 = vpop.f32.mrf.mxu3  ;;  %v766_v40 = vadd.f32 %v765_v38, %v375_v30  ;;  %v779_v41 = vpop.f32.mrf.mxu1 }
 0x131   : > { %v806_v39 = vadd.f32 %v805_v37, %v792_v36  ;;  %v780_v42 = vadd.f32 %v779_v41, %v766_v40 }
 0x133   : > { %811 = vst [vmem:[%s1929_s9 + $0x8] sm:$0xff] %v806_v39 }
 0x136   : > { %v793_v43 = vpop.f32.mrf.mxu2 }
 0x137   : > { %v794_v44 = vadd.f32 %v793_v43, %v780_v42  ;;  %v807_v45 = vpop.f32.mrf.mxu3  ;;  %821 = sbr.rel (!%p1683_p9) target bundleno = 348 (0x15c), region = 48 }
 0x139   : > { %v808_v46 = vadd.f32 %v807_v45, %v794_v44 }
 0x13b   : > { %813 = vst [vmem:[%s1929_s9 + $0x18] sm:$0xff] %v808_v46 }
 0x13c   : > { %s2044_s23 = smov (!%p825_p5, %s824_s23), 2 }
 0x13d   : > { %s1238_s7 = sshll.u32 %s2044_s23, 4 }
 0x13e   : > { %s828_s5 = ssub.s32 32, %s1238_s7 }
 0x13f   : > { %s829_s20 = sshll.u32 %s828_s5, 4 }
 0x140   : > { %830 = vsyncadd %s815_s11, %s829_s20  ;;  %p1944_p8 = scmp.ne.s32.totalorder %s1238_s7, 0  ;;  %s1313_s21 = sshll.u32 %s1586_s15, 4 }
 0x141   : > { %s835_s27 = scalar_lea.hbm %s2009_s3, %s1313_s21  ;;  %s1241_s19 = sshll.u32 %s2044_s23, 3 }
 0x142   : > { %s838_s0 = sshll.u32 %s1929_s9, 4  ;;  %s840_s22 = sshll.u32 %s835_s27, 4  ;;  %s1954_s0 = int_to_ptr.vmem [resolvable:$true] %s838_s0  ;;  %s1956_s22 = int_to_ptr.hbm [resolvable:$true] %s840_s22 }
 0x143   : > { %s1315_s26 = sshll.u32 %s2044_s23, 8  ;;  %s1497_s6 = sshra.s32 %s1954_s0, 4  ;;  %s1498_s6 = int_to_ptr.vmem [resolvable:$true] %s1497_s6 }
 0x144   : > { %s1499_s28 = sshrl.u32 %s1315_s26, 4  ;;  %s1603_s15 = smov [#allocation8]  }
 0x145   : > { %s1504_s18 = scalar_lea.vmem %s1498_s6, %s1499_s28  ;;  %s1508_s24 = scalar_lea.vmem %s1603_s15, 64 }
 0x146   : > { %p1505_p9 = scmp.ne.s32.totalorder %s1498_s6, %s1504_s18  ;;  %p1510_p4 = scmp.lt.s32.totalorder %s1508_s24, %s1504_s18 }
 0x148   : > { %p1506_p0 = pnand %p1505_p9, %p1944_p8 }
 0x14a   : > { %p1507_p3 = pneg %p1506_p0 }
 0x14c   : > { %p1512_p13 = pnand %p1510_p4, %p1507_p3 }
 0x14e   : > { %1515 = shalt.err (!%p1512_p13)
}
 0x14f   : > { %s1516_s4 = sshra.s32 %s1956_s22, 4  ;;  %s1527_s5 = scalar_lea.hbm %s2009_s3, 48  ;;  %s1517_s4 = int_to_ptr.hbm [resolvable:$true] %s1516_s4 }
 0x150   : > { %s1523_s9 = scalar_lea.hbm %s1517_s4, %s1499_s28  ;;  %p1528_p7 = scmp.lt.s32.totalorder %s1517_s4, %s2009_s3 }
 0x151   : > { %p1524_p1 = scmp.ne.s32.totalorder %s1517_s4, %s1523_s9  ;;  %p1529_p10 = scmp.lt.s32.totalorder %s1527_s5, %s1523_s9 }
 0x153   : > { %p1525_p2 = pnand %p1524_p1, %p1944_p8  ;;  %p1530_p12 = por %p1529_p10, %p1528_p7 }
 0x155   : > { %p1526_p6 = pneg %p1525_p2 }
 0x157   : > { %p1531_p5 = pnand %p1530_p12, %p1526_p6 }
 0x159   : > { %1534 = shalt.err (!%p1531_p5)
}
 0x15a   : > { %s1604_s8 = smov 256   ;;  %s1605_s10 = smov 384  }
 0x15b   : > { %846 = dma.vmem_to_hbm [thread:$0]  (%p1944_p8), %s1954_s0, %s1315_s26, %s1956_s22, %s815_s11, %s1604_s8, %s1605_s10, %s1241_s19  }
 0x15c PF: > { %s855_s6 = sand.u32 1, %s1574_s12   ;;  %p2029_p9 = scmp.ge.s32.totalorder %s1594_s17, 2 }
 0x15d   : > { %s856_s28 = scalar_lea.sflag [#allocation4], %s855_s6 }
 0x15e   : > { %p1328_p0 = pnand %p2029_p9, %p1690_p11 }
 0x160   : > { %p1329_p3 = pneg %p1328_p0 }
 0x162   : > { %1569 = dma.done.wait (%p1329_p3), %s856_s28, 512  }
 0x163   : > { %1571 = vsyncadd (%p1329_p3), %s856_s28, 4294966784  ;;  %s20_s17 = sadd.s32 1, %s1594_s17   ;;  %s2030_s30 = sld [smem:[#allocation13_spill]] }
 0x164   : > { %p17_p4 = scmp.ge.s32.totalorder %s20_s17, 4   ;;  %s2031_s11 = sld [smem:[#allocation12_spill]] }
 0x165   : > { %s2032_s12 = smov %s1578_s13  ;;  %s2033_s13 = smov %s1582_s14 }
 0x166   : > { %s2035_s15 = smov %s1590_s16  ;;  %19 = sbr.rel (!%p17_p4) target bundleno = 9 (0x9), region = 94 }
 0x169   : > { %s2034_s14 = smov %s2030_s30 }
 0x16a   : > { %s2036_s16 = smov %s2031_s11 }
 0x16b   :  { %862 = vsyncpa [#allocation3], 1 }
 0x16c   :  { %864 = vsyncpa [#allocation3 + $0x1], 1 }
 0x16d   :  { %865 = vsyncpa [#allocation6], 1 }
 0x16e   :  { %867 = vsyncpa [#allocation6 + $0x1], 1 }
 0x16f   :  { %868 = vsyncpa [#allocation4], 1 }
 0x170   :  { %870 = vsyncpa [#allocation4 + $0x1], 1 }

</bundles_post_ra>
